<compile_context>
chip_gen: v5e
topology: v5e:2x2
jax: 0.10.0
libtpu: 0.0.40
codegen_flags: <defaults>
</compile_context>

<pallas_src>
import numpy as np
import jax
import jax.numpy as jnp
from jax import lax
from jax.experimental import pallas as pl
from jax.experimental.pallas import tpu as pltpu

# Problem sizes (consistent with the module: dim=C, num_heads=8).
B, N, C, H = 2, 64, 64, 8
DH = C // H
CP = B * C                 # 128 packed lanes (batch folded into channels)
EPS = 1e-12                # torch F.normalize default eps
NEG_BIG = -1e30            # finite "masked" logit; exp underflows to exactly 0


def xca_kernel(x_ref, wqkv_ref, wp_ref, bp_ref, temp_ref, mask_ref, o_ref):
    # x_ref: (N, CP) bf16, lane l = b*C + c.
    x = x_ref[...]                                                   # (64, 128) bf16

    # Fused block-diagonal QKV projection: one MXU matmul, bf16 ops, f32 acc.
    qkv = jnp.dot(x, wqkv_ref[...],
                  preferred_element_type=jnp.float32)                # (64, 384) f32

    # Tile-aligned slices: q/k/v each start on a 128-lane boundary.
    q = qkv[:, 0 * CP:1 * CP]                                        # (N, CP)
    k = qkv[:, 1 * CP:2 * CP]
    v = qkv[:, 2 * CP:3 * CP]

    # F.normalize over tokens (per channel): x * rsqrt(max(sum(x^2), eps^2)).
    qn = q * lax.rsqrt(jnp.maximum(
        jnp.sum(q * q, axis=0, keepdims=True), EPS * EPS))
    kn = k * lax.rsqrt(jnp.maximum(
        jnp.sum(k * k, axis=0, keepdims=True), EPS * EPS))

    # Fold the per-head temperature into q's lanes (scales in-head logits).
    qn = (qn * temp_ref[...]).astype(jnp.bfloat16)
    kn = kn.astype(jnp.bfloat16)

    # Transposed logits: attn_t[j, i] = sum_n kn[n, j] * qn[n, i].
    attn_t = lax.dot_general(kn, qn, (((0,), (0,)), ((), ())),
                             preferred_element_type=jnp.float32)     # (CP, CP)
    attn_t = attn_t + mask_ref[...]          # additive head/batch block mask

    # Softmax over the key-channel axis (axis 0 of attn_t).
    attn_t = attn_t - jnp.max(attn_t, axis=0, keepdims=True)
    e = jnp.exp(attn_t)
    p = e * pl.reciprocal(jnp.sum(e, axis=0, keepdims=True), approx=True)

    # out[n, i] = sum_j v[n, j] * p[j, i]  -- plain (lhs1, rhs0) contraction.
    out = jnp.dot(v.astype(jnp.bfloat16), p.astype(jnp.bfloat16),
                  preferred_element_type=jnp.float32)                # (N, CP)

    # Block-diagonal output projection + bias.
    y = jnp.dot(out.astype(jnp.bfloat16), wp_ref[...],
                preferred_element_type=jnp.float32) + bp_ref[...]
    o_ref[...] = y.astype(o_ref.dtype)                               # unmasked vst


def prepare_params(wqkv, temperature, wp, bp):
    """One-time weight prep (hoisted out of the per-call path).

    torch Linear computes x @ W^T.  Builds lane-packed, block-diagonal fused
    weights so the two batch elements live on disjoint 64-lane halves.
    """
    wqkv = jnp.asarray(wqkv, jnp.float32)            # (3C, C)
    wp = jnp.asarray(wp, jnp.float32)                # (C, C)
    bp = jnp.asarray(bp, jnp.float32).reshape(C)
    temperature = jnp.asarray(temperature, jnp.float32).reshape(H)

    wqkv_t = wqkv.T                                  # (C, 3C) = [Wq^T | Wk^T | Wv^T]
    zeros = jnp.zeros((C, C), jnp.float32)

    def blk(w):                                      # (C, C) -> block_diag(w, w)
        top = jnp.concatenate([w, zeros], axis=1)
        bot = jnp.concatenate([zeros, w], axis=1)
        return jnp.concatenate([top, bot], axis=0)   # (CP, CP)

    wqkv_blk = jnp.concatenate(
        [blk(wqkv_t[:, 0 * C:1 * C]),
         blk(wqkv_t[:, 1 * C:2 * C]),
         blk(wqkv_t[:, 2 * C:3 * C])], axis=1).astype(jnp.bfloat16)  # (CP, 3CP)

    wp_blk = blk(wp.T).astype(jnp.bfloat16)                          # (CP, CP)
    bp_tiled = jnp.tile(bp.reshape(1, C), (1, B)).astype(jnp.float32)        # (1, CP)
    temp_tiled = jnp.tile(jnp.repeat(temperature, DH).reshape(1, C),
                          (1, B)).astype(jnp.float32)                        # (1, CP)

    # Additive head-block mask; lane l = b*C + c -> "head id" l // DH, which
    # also separates the two batches (ids 0-7 vs 8-15).
    head_id = np.arange(CP) // DH
    mask = np.where(head_id[:, None] == head_id[None, :],
                    0.0, NEG_BIG).astype(np.float32)                         # (CP, CP)
    mask = jnp.asarray(mask)

    return wqkv_blk, wp_blk, bp_tiled, temp_tiled, mask


def xca_pallas(x, wqkv_blk, wp_blk, bp_tiled, temp_tiled, mask):
    """x: (B, N, C) f32; remaining args from prepare_params()."""
    # Lane-pack the batch: (B, N, C) -> (N, B*C), bf16 (halves exposed DMA).
    x_packed = jnp.transpose(x, (1, 0, 2)).reshape(N, CP).astype(jnp.bfloat16)

    def full(shp):
        return pl.BlockSpec(shp, lambda i: tuple(0 for _ in shp))

    out = pl.pallas_call(
        xca_kernel,
        out_shape=jax.ShapeDtypeStruct((N, CP), jnp.float32),
        grid_spec=pltpu.PrefetchScalarGridSpec(
            num_scalar_prefetch=0,
            grid=(1,),                          # single step on all generations
            in_specs=[
                full((N, CP)),                  # lane-packed tokens (bf16)
                full((CP, 3 * CP)),             # block-diag fused Wqkv (bf16)
                full((CP, CP)),                 # block-diag Wp (bf16)
                full((1, CP)),                  # proj bias (tiled)
                full((1, CP)),                  # per-lane temperature
                full((CP, CP)),                 # additive head-block mask
            ],
            out_specs=full((N, CP)),
        ),
        compiler_params=pltpu.CompilerParams(
            dimension_semantics=("arbitrary",)),
    )(x_packed, wqkv_blk, wp_blk, bp_tiled, temp_tiled, mask)

    # (N, B*C) -> (B, N, C)
    return jnp.transpose(out.reshape(N, B, C), (1, 0, 2))


def xca_reference(x, wqkv, temperature, wp, bp):
    """Pure-JAX (f32) transcription of the PyTorch forward, for verification."""
    qkv = x @ wqkv.T                                   # (B, N, 3C)
    qkv = qkv.reshape(B, N, 3, H, DH).transpose(2, 0, 3, 1, 4)
    q, k, v = qkv[0], qkv[1], qkv[2]                   # (B, H, N, DH)
    q = jnp.swapaxes(q, -2, -1)                        # (B, H, DH, N)
    k = jnp.swapaxes(k, -2, -1)
    v = jnp.swapaxes(v, -2, -1)

    def l2norm(t):
        nrm = jnp.sqrt(jnp.sum(t * t, axis=-1, keepdims=True))
        return t / jnp.maximum(nrm, EPS)

    q = l2norm(q)
    k = l2norm(k)
    attn = (q @ jnp.swapaxes(k, -2, -1)) * temperature.reshape(1, H, 1, 1)
    attn = jax.nn.softmax(attn, axis=-1)
    out = attn @ v                                     # (B, H, DH, N)
    out = out.transpose(0, 3, 1, 2).reshape(B, N, C)
    return out @ wp.T + bp


if __name__ == "__main__":
    key = jax.random.PRNGKey(0)
    kx, kqkv, kp, kb = jax.random.split(key, 4)

    x = jax.random.normal(kx, (B, N, C), dtype=jnp.float32)
    wqkv = 0.05 * jax.random.normal(kqkv, (3 * C, C), dtype=jnp.float32)
    wp = 0.05 * jax.random.normal(kp, (C, C), dtype=jnp.float32)
    bp = 0.01 * jax.random.normal(kb, (C,), dtype=jnp.float32)
    temperature = jnp.ones((H,), dtype=jnp.float32)    # nn.Parameter(ones(H,1,1))

    params = prepare_params(wqkv, temperature, wp, bp)  # hoisted, done once
    xca_fn = jax.jit(xca_pallas)

    y = jax.block_until_ready(xca_fn(x, *params))

    y_ref = xca_reference(x, wqkv, temperature, wp, bp)
    # bf16 MXU operands (f32 accumulation) + approx reciprocal -> bf16-level tolerance.
    np.testing.assert_allclose(np.asarray(y), np.asarray(y_ref),
                               rtol=2e-2, atol=2e-2)
    print("KERNEL_OK")
</pallas_src>

<mosaic_0001>
module attributes {stable_mosaic.version = 11 : i64} {
  func.func @xca_kernel(%arg0: i32, %arg1: memref<64x128xbf16, #tpu.memory_space<vmem>>, %arg2: memref<128x384xbf16, #tpu.memory_space<vmem>>, %arg3: memref<128x128xbf16, #tpu.memory_space<vmem>>, %arg4: memref<1x128xf32, #tpu.memory_space<vmem>>, %arg5: memref<1x128xf32, #tpu.memory_space<vmem>>, %arg6: memref<128x128xf32, #tpu.memory_space<vmem>>, %arg7: memref<64x128xf32, #tpu.memory_space<vmem>>) attributes {dimension_semantics = [#tpu.dimension_semantics<arbitrary>], iteration_bounds = array<i64: 1>, scalar_prefetch = 0 : i64, scratch_operands = 0 : i64, tpu.core_type = #tpu.core_type<tc>, window_params = [{pipeline_mode = #tpu.pipeline_mode<synchronous>, transform_indices = @transform_0, window_bounds = array<i64: 64, 128>}, {pipeline_mode = #tpu.pipeline_mode<synchronous>, transform_indices = @transform_1, window_bounds = array<i64: 128, 384>}, {pipeline_mode = #tpu.pipeline_mode<synchronous>, transform_indices = @transform_2, window_bounds = array<i64: 128, 128>}, {pipeline_mode = #tpu.pipeline_mode<synchronous>, transform_indices = @transform_3, window_bounds = array<i64: 1, 128>}, {pipeline_mode = #tpu.pipeline_mode<synchronous>, transform_indices = @transform_4, window_bounds = array<i64: 1, 128>}, {pipeline_mode = #tpu.pipeline_mode<synchronous>, transform_indices = @transform_5, window_bounds = array<i64: 128, 128>}, {pipeline_mode = #tpu.pipeline_mode<synchronous>, transform_indices = @transform_6, window_bounds = array<i64: 64, 128>}]} {
    %c0 = arith.constant 0 : index
    %c0_0 = arith.constant 0 : index
    %0 = vector.load %arg1[%c0, %c0_0] : memref<64x128xbf16, #tpu.memory_space<vmem>>, vector<64x128xbf16>
    %c0_1 = arith.constant 0 : index
    %c0_2 = arith.constant 0 : index
    %1 = vector.load %arg2[%c0_1, %c0_2] : memref<128x384xbf16, #tpu.memory_space<vmem>>, vector<128x384xbf16>
    %cst = arith.constant dense<0.000000e+00> : vector<64x384xf32>
    %2 = tpu.matmul %0, %1, %cst {dimension_numbers = #tpu.dot_dimension_numbers<[1], [0], [0], [1], [0, 0, 1, 1], [], []>} : vector<64x128xbf16>, vector<128x384xbf16>, vector<64x384xf32> -> vector<64x384xf32>
    %3 = vector.extract_strided_slice %2 {offsets = [0, 0], sizes = [64, 128], strides = [1, 1]} : vector<64x384xf32> to vector<64x128xf32>
    %4 = vector.extract_strided_slice %2 {offsets = [0, 128], sizes = [64, 128], strides = [1, 1]} : vector<64x384xf32> to vector<64x128xf32>
    %5 = vector.extract_strided_slice %2 {offsets = [0, 256], sizes = [64, 128], strides = [1, 1]} : vector<64x384xf32> to vector<64x128xf32>
    %6 = arith.mulf %3, %3 : vector<64x128xf32>
    %cst_3 = arith.constant dense<0.000000e+00> : vector<128xf32>
    %7 = vector.multi_reduction <add>, %6, %cst_3 [0] : vector<64x128xf32> to vector<128xf32>
    %8 = vector.shape_cast %7 : vector<128xf32> to vector<1x128xf32>
    %cst_4 = arith.constant 1.000000e-24 : f32
    %9 = vector.broadcast %cst_4 : f32 to vector<1x128xf32>
    %10 = arith.maximumf %8, %9 : vector<1x128xf32>
    %11 = math.rsqrt %10 : vector<1x128xf32>
    %12 = vector.broadcast %11 : vector<1x128xf32> to vector<64x128xf32>
    %13 = arith.mulf %3, %12 : vector<64x128xf32>
    %14 = arith.mulf %4, %4 : vector<64x128xf32>
    %cst_5 = arith.constant dense<0.000000e+00> : vector<128xf32>
    %15 = vector.multi_reduction <add>, %14, %cst_5 [0] : vector<64x128xf32> to vector<128xf32>
    %16 = vector.shape_cast %15 : vector<128xf32> to vector<1x128xf32>
    %cst_6 = arith.constant 1.000000e-24 : f32
    %17 = vector.broadcast %cst_6 : f32 to vector<1x128xf32>
    %18 = arith.maximumf %16, %17 : vector<1x128xf32>
    %19 = math.rsqrt %18 : vector<1x128xf32>
    %20 = vector.broadcast %19 : vector<1x128xf32> to vector<64x128xf32>
    %21 = arith.mulf %4, %20 : vector<64x128xf32>
    %c0_7 = arith.constant 0 : index
    %c0_8 = arith.constant 0 : index
    %22 = vector.load %arg5[%c0_7, %c0_8] : memref<1x128xf32, #tpu.memory_space<vmem>>, vector<1x128xf32>
    %23 = vector.broadcast %22 : vector<1x128xf32> to vector<64x128xf32>
    %24 = arith.mulf %13, %23 : vector<64x128xf32>
    %25 = arith.truncf %24 : vector<64x128xf32> to vector<64x128xbf16>
    %26 = arith.truncf %21 : vector<64x128xf32> to vector<64x128xbf16>
    %cst_9 = arith.constant dense<0.000000e+00> : vector<128x128xf32>
    %27 = tpu.matmul %26, %25, %cst_9 {dimension_numbers = #tpu.dot_dimension_numbers<[0], [0], [1], [1], [0, 1, 1, 1], [], []>} : vector<64x128xbf16>, vector<64x128xbf16>, vector<128x128xf32> -> vector<128x128xf32>
    %c0_10 = arith.constant 0 : index
    %c0_11 = arith.constant 0 : index
    %28 = vector.load %arg6[%c0_10, %c0_11] : memref<128x128xf32, #tpu.memory_space<vmem>>, vector<128x128xf32>
    %29 = arith.addf %27, %28 : vector<128x128xf32>
    %cst_12 = arith.constant dense<0xFF800000> : vector<128xf32>
    %30 = vector.multi_reduction <maximumf>, %29, %cst_12 [0] : vector<128x128xf32> to vector<128xf32>
    %31 = vector.shape_cast %30 : vector<128xf32> to vector<1x128xf32>
    %32 = vector.broadcast %31 : vector<1x128xf32> to vector<128x128xf32>
    %33 = arith.subf %29, %32 : vector<128x128xf32>
    %34 = math.exp %33 : vector<128x128xf32>
    %cst_13 = arith.constant dense<0.000000e+00> : vector<128xf32>
    %35 = vector.multi_reduction <add>, %34, %cst_13 [0] : vector<128x128xf32> to vector<128xf32>
    %36 = vector.shape_cast %35 : vector<128xf32> to vector<1x128xf32>
    %37 = tpu.reciprocal %36 {approx = true} : vector<1x128xf32> -> vector<1x128xf32>
    %38 = vector.broadcast %37 : vector<1x128xf32> to vector<128x128xf32>
    %39 = arith.mulf %34, %38 : vector<128x128xf32>
    %40 = arith.truncf %5 : vector<64x128xf32> to vector<64x128xbf16>
    %41 = arith.truncf %39 : vector<128x128xf32> to vector<128x128xbf16>
    %cst_14 = arith.constant dense<0.000000e+00> : vector<64x128xf32>
    %42 = tpu.matmul %40, %41, %cst_14 {dimension_numbers = #tpu.dot_dimension_numbers<[1], [0], [0], [1], [0, 0, 1, 1], [], []>} : vector<64x128xbf16>, vector<128x128xbf16>, vector<64x128xf32> -> vector<64x128xf32>
    %43 = arith.truncf %42 : vector<64x128xf32> to vector<64x128xbf16>
    %c0_15 = arith.constant 0 : index
    %c0_16 = arith.constant 0 : index
    %44 = vector.load %arg3[%c0_15, %c0_16] : memref<128x128xbf16, #tpu.memory_space<vmem>>, vector<128x128xbf16>
    %cst_17 = arith.constant dense<0.000000e+00> : vector<64x128xf32>
    %45 = tpu.matmul %43, %44, %cst_17 {dimension_numbers = #tpu.dot_dimension_numbers<[1], [0], [0], [1], [0, 0, 1, 1], [], []>} : vector<64x128xbf16>, vector<128x128xbf16>, vector<64x128xf32> -> vector<64x128xf32>
    %c0_18 = arith.constant 0 : index
    %c0_19 = arith.constant 0 : index
    %46 = vector.load %arg4[%c0_18, %c0_19] : memref<1x128xf32, #tpu.memory_space<vmem>>, vector<1x128xf32>
    %47 = vector.broadcast %46 : vector<1x128xf32> to vector<64x128xf32>
    %48 = arith.addf %45, %47 : vector<64x128xf32>
    %c0_20 = arith.constant 0 : index
    %c0_21 = arith.constant 0 : index
    %49 = vector.load %arg7[%c0_20, %c0_21] : memref<64x128xf32, #tpu.memory_space<vmem>>, vector<64x128xf32>
    tpu.vector_store %arg7[%c0_20, %c0_21], %48 {strides = array<i32>} : memref<64x128xf32, #tpu.memory_space<vmem>>, vector<64x128xf32>,
    return
  }
  func.func @transform_0(%arg0: i32) -> (i32, i32) {
    %c0_i32 = arith.constant 0 : i32
    %c0_i32_0 = arith.constant 0 : i32
    %c0_i32_1 = arith.constant 0 : i32
    return %c0_i32, %c0_i32_0 : i32, i32
  }
  func.func @transform_1(%arg0: i32) -> (i32, i32) {
    %c0_i32 = arith.constant 0 : i32
    %c0_i32_0 = arith.constant 0 : i32
    %c0_i32_1 = arith.constant 0 : i32
    return %c0_i32, %c0_i32_0 : i32, i32
  }
  func.func @transform_2(%arg0: i32) -> (i32, i32) {
    %c0_i32 = arith.constant 0 : i32
    %c0_i32_0 = arith.constant 0 : i32
    %c0_i32_1 = arith.constant 0 : i32
    return %c0_i32, %c0_i32_0 : i32, i32
  }
  func.func @transform_3(%arg0: i32) -> (i32, i32) {
    %c0_i32 = arith.constant 0 : i32
    %c0_i32_0 = arith.constant 0 : i32
    %c0_i32_1 = arith.constant 0 : i32
    return %c0_i32, %c0_i32_0 : i32, i32
  }
  func.func @transform_4(%arg0: i32) -> (i32, i32) {
    %c0_i32 = arith.constant 0 : i32
    %c0_i32_0 = arith.constant 0 : i32
    %c0_i32_1 = arith.constant 0 : i32
    return %c0_i32, %c0_i32_0 : i32, i32
  }
  func.func @transform_5(%arg0: i32) -> (i32, i32) {
    %c0_i32 = arith.constant 0 : i32
    %c0_i32_0 = arith.constant 0 : i32
    %c0_i32_1 = arith.constant 0 : i32
    return %c0_i32, %c0_i32_0 : i32, i32
  }
  func.func @transform_6(%arg0: i32) -> (i32, i32) {
    %c0_i32 = arith.constant 0 : i32
    %c0_i32_0 = arith.constant 0 : i32
    %c0_i32_1 = arith.constant 0 : i32
    return %c0_i32, %c0_i32_0 : i32, i32
  }
}

</mosaic_0001>

<bundles_post_ra>
// kernel: xca_pallas.1
= control target key start
LH: loop header
LB: loop body
LE: loop exit
PB: predicated region body
PF: predicated region fallthrough
CT: control target
= control target key end

     0   :  { %vm435_vm6 = vcmask 523264   ;;  %s1468_s1 = inlined_call_operand.vmem [shape: bf16[128,384], index: 1, kind: input, shape index: {}]   ;;  %s1469_s0 = inlined_call_operand.vmem [shape: bf16[64,128], index: 0, kind: input, shape index: {}]   ;;  %s1470_s4 = inlined_call_operand.vmem [shape: f32[1,128], index: 4, kind: input, shape index: {}]   ;;  %s1471_s5 = inlined_call_operand.vmem [shape: f32[128,128], index: 5, kind: input, shape index: {}]   ;;  %s1472_s2 = inlined_call_operand.vmem [shape: bf16[128,128], index: 2, kind: input, shape index: {}]   ;;  %s1473_s3 = inlined_call_operand.vmem [shape: f32[1,128], index: 3, kind: input, shape index: {}]   ;;  %s1474_s6 = inlined_call_operand.vmem [shape: f32[64,128], index: 6, kind: output, shape index: {}]  }
   0x1   :  { %v947_v0 = vld [vmem:[%s1468_s1 + $0xac] sm:$0xf]  ;;  %v874_v1 = vld [vmem:[%s1468_s1 + $0xb4] sm:$0xf0]  ;;  %v944_v2 = vld [vmem:[%s1468_s1 + $0x94] sm:$0xf] }
   0x2   :  { %v877_v3 = vor.u32 %v947_v0, %v874_v1  ;;  %v862_v4 = vld [vmem:[%s1468_s1 + $0x9c] sm:$0xf0]  ;;  %v941_v6 = vld [vmem:[%s1468_s1 + $0x7c] sm:$0xf]  ;;  %v850_v7 = vld [vmem:[%s1468_s1 + $0x84] sm:$0xf0] }
   0x3   :  { %v865_v5 = vor.u32 %v944_v2, %v862_v4  ;;  %v853_v8 = vor.u32 %v941_v6, %v850_v7  ;;  %v938_v9 = vld [vmem:[%s1468_s1 + $0x64] sm:$0xf]  ;;  %v838_v10 = vld [vmem:[%s1468_s1 + $0x6c] sm:$0xf0]  ;;  %v935_v12 = vld [vmem:[%s1468_s1 + $0x4c] sm:$0xf] }
   0x4   :  { %245 = vmatpush.bf16.msra.mxu1 %v877_v3  ;;  %v841_v11 = vor.u32 %v938_v9, %v838_v10  ;;  %v826_v13 = vld [vmem:[%s1468_s1 + $0x54] sm:$0xf0]  ;;  %v932_v15 = vld [vmem:[%s1468_s1 + $0x34] sm:$0xf]  ;;  %v814_v16 = vld [vmem:[%s1468_s1 + $0x3c] sm:$0xf0] }
   0x5   :  { %v829_v14 = vor.u32 %v935_v12, %v826_v13  ;;  %v817_v17 = vor.u32 %v932_v15, %v814_v16  ;;  %v929_v18 = vld [vmem:[%s1468_s1 + $0x1c] sm:$0xf]  ;;  %v802_v19 = vld [vmem:[%s1468_s1 + $0x24] sm:$0xf0]  ;;  %v926_v21 = vld [vmem:[%s1468_s1 + $0x4] sm:$0xf] }
   0x6   :  { %v805_v20 = vor.u32 %v929_v18, %v802_v19  ;;  %v790_v22 = vld [vmem:[%s1468_s1 + $0xc] sm:$0xf0]  ;;  %v1101_v24 = vld [vmem:[%s1469_s0] sm:$0xff]  ;;  %v1107_v25 = vld [vmem:[%s1469_s0 + $0x8] sm:$0xff] }
   0x7   :  { %v793_v23 = vor.u32 %v926_v21, %v790_v22  ;;  %v872_v26 = vld [vmem:[%s1468_s1 + $0xa8] sm:$0xf]  ;;  %v948_v27 = vld [vmem:[%s1468_s1 + $0xb0] sm:$0xf0]  ;;  %v860_v28 = vld [vmem:[%s1468_s1 + $0x90] sm:$0xf] }
   0x8   :  { %246 = vmatpush.bf16.msra.mxu1 %v865_v5  ;;  %v873_v29 = vor.u32 %v948_v27, %v872_v26  ;;  %v945_v30 = vld [vmem:[%s1468_s1 + $0x98] sm:$0xf0]  ;;  %v848_v32 = vld [vmem:[%s1468_s1 + $0x78] sm:$0xf]  ;;  %v942_v33 = vld [vmem:[%s1468_s1 + $0x80] sm:$0xf0] }
   0x9   :  { %v861_v31 = vor.u32 %v945_v30, %v860_v28  ;;  %v849_v34 = vor.u32 %v942_v33, %v848_v32  ;;  %v836_v35 = vld [vmem:[%s1468_s1 + $0x60] sm:$0xf]  ;;  %v939_v36 = vld [vmem:[%s1468_s1 + $0x68] sm:$0xf0]  ;;  %v1137_v38 = vld [vmem:[%s1469_s0 + $0x10] sm:$0xff] }
   0xa   :  { %216 = vmatpush.bf16.msra.mxu0 %v873_v29  ;;  %958 = vmatpush.bf16.msra.mxu2 %v873_v29  ;;  %v837_v37 = vor.u32 %v939_v36, %v836_v35  ;;  %v824_v39 = vld [vmem:[%s1468_s1 + $0x48] sm:$0xf]  ;;  %v936_v40 = vld [vmem:[%s1468_s1 + $0x50] sm:$0xf0]  ;;  %v812_v42 = vld [vmem:[%s1468_s1 + $0x30] sm:$0xf] }
   0xb   :  { %v825_v41 = vor.u32 %v936_v40, %v824_v39  ;;  %v933_v43 = vld [vmem:[%s1468_s1 + $0x38] sm:$0xf0]  ;;  %v800_v45 = vld [vmem:[%s1468_s1 + $0x18] sm:$0xf]  ;;  %v930_v46 = vld [vmem:[%s1468_s1 + $0x20] sm:$0xf0] }
   0xc   :  { %247 = vmatpush.bf16.msra.mxu1 %v853_v8  ;;  %v813_v44 = vor.u32 %v933_v43, %v812_v42  ;;  %v801_v47 = vor.u32 %v930_v46, %v800_v45  ;;  %v788_v48 = vld [vmem:[%s1468_s1] sm:$0xf]  ;;  %v927_v49 = vld [vmem:[%s1468_s1 + $0x8] sm:$0xf0]  ;;  %v1167_v51 = vld [vmem:[%s1469_s0 + $0x18] sm:$0xff] }
   0xd   :  { %v789_v50 = vor.u32 %v927_v49, %v788_v48 }
   0xe   :  { %217 = vmatpush.bf16.msra.mxu0 %v861_v31  ;;  %959 = vmatpush.bf16.msra.mxu2 %v861_v31 }
  0x10   :  { %248 = vmatpush.bf16.msra.mxu1 %v841_v11 }
  0x12   :  { %218 = vmatpush.bf16.msra.mxu0 %v849_v34  ;;  %960 = vmatpush.bf16.msra.mxu2 %v849_v34 }
  0x14   :  { %249 = vmatpush.bf16.msra.mxu1 %v829_v14 }
  0x16   :  { %219 = vmatpush.bf16.msra.mxu0 %v837_v37  ;;  %961 = vmatpush.bf16.msra.mxu2 %v837_v37 }
  0x18   :  { %250 = vmatpush.bf16.msra.mxu1 %v817_v17 }
  0x1a   :  { %220 = vmatpush.bf16.msra.mxu0 %v825_v41  ;;  %962 = vmatpush.bf16.msra.mxu2 %v825_v41 }
  0x1c   :  { %251 = vmatpush.bf16.msra.mxu1 %v805_v20 }
  0x1e   :  { %221 = vmatpush.bf16.msra.mxu0 %v813_v44  ;;  %963 = vmatpush.bf16.msra.mxu2 %v813_v44 }
  0x20   :  { %252 = vmatpush.bf16.msra.mxu1 %v793_v23 }
  0x22   :  { %222 = vmatpush.bf16.msra.mxu0 %v801_v47  ;;  %964 = vmatpush.bf16.msra.mxu2 %v801_v47 }
  0x23   :  { %253 = vmatmul.bf16.vlgmr.msra.gmra.mxu1 %v1101_v24 }
  0x26   :  { %223 = vmatpush.bf16.msra.mxu0 %v789_v50  ;;  %965 = vmatpush.bf16.msra.mxu2 %v789_v50 }
  0x29   :  { %224 = vmatmul.bf16.vlgmr.msra.gmra.mxu0 %v1101_v24  ;;  %234 = vmatmul.bf16.vlgmr.msra.gmra.mxu2 %v1137_v38 }
  0x33   :  { %258 = vmatmul.bf16.gmra.mxu1 %v1107_v25 }
  0x39   :  { %229 = vmatmul.bf16.gmra.mxu0 %v1107_v25  ;;  %239 = vmatmul.bf16.gmra.mxu2 %v1167_v51 }
  0x43   :  { %263 = vmatmul.bf16.gmra.mxu1 %v1137_v38 }
  0x53   :  { %268 = vmatmul.bf16.gmra.mxu1 %v1167_v51 }
  0xa0   :  { %v254_v52 = vpop.f32.mrf.mxu1 }
  0xa1   :  { %v343_v59 = vmul.f32 %v254_v52, %v254_v52 }
  0xa6   :  { %v1190_v14 = vpop.f32.mrf.mxu0 }
  0xa7   :  { %v303_v21 = vmul.f32 %v1190_v14, %v1190_v14 }
  0xa8   :  { %v256_v53 = vpop.f32.mrf.mxu1 }
  0xa9   :  { %v344_v58 = vmul.f32 %v256_v53, %v256_v53 }
  0xab   :  { %v351_v61 = vadd.f32 %v344_v58, %v343_v59 }
  0xac   :  { %v1192_v18 = vpop.f32.mrf.mxu2 }
  0xad   :  { %v307_v39 = vmul.f32 %v1192_v18, %v1192_v18 }
  0xae   :  { %v1194_v20 = vpop.f32.mrf.mxu0 }
  0xaf   :  { %v304_v22 = vmul.f32 %v1194_v20, %v1194_v20 }
  0xb0   :  { %v1174_v54 = vpop.f32.mrf.mxu1 }
  0xb1   :  { %v345_v60 = vmul.f32 %v1174_v54, %v1174_v54  ;;  %v311_v30 = vadd.f32 %v304_v22, %v303_v21 }
  0xb3   :  { %v352_v0 = vadd.f32 %v351_v61, %v345_v60 }
  0xb4   :  { %v237_v27 = vpop.f32.mrf.mxu2 }
  0xb5   :  { %v308_v42 = vmul.f32 %v237_v27, %v237_v27 }
  0xb6   :  { %v230_v26 = vpop.f32.mrf.mxu0 }
  0xb7   :  { %v305_v31 = vmul.f32 %v230_v26, %v230_v26 }
  0xb8   :  { %v1176_v55 = vpop.f32.mrf.mxu1 }
  0xb9   :  { %v346_v62 = vmul.f32 %v1176_v55, %v1176_v55  ;;  %v312_v34 = vadd.f32 %v311_v30, %v305_v31 }
  0xbb   :  { %v353_v2 = vadd.f32 %v352_v0, %v346_v62 }
  0xbc   :  { %v240_v36 = vpop.f32.mrf.mxu2 }
  0xbd   :  { %v309_v47 = vmul.f32 %v240_v36, %v240_v36 }
  0xbe   :  { %v232_v35 = vpop.f32.mrf.mxu0 }
  0xbf   :  { %v306_v40 = vmul.f32 %v232_v35, %v232_v35 }
  0xc0   :  { %v264_v56 = vpop.f32.mrf.mxu1 }
  0xc1   :  { %v347_v1 = vmul.f32 %v264_v56, %v264_v56  ;;  %v313_v43 = vadd.f32 %v312_v34, %v306_v40 }
  0xc3   :  { %v354_v4 = vadd.f32 %v353_v2, %v347_v1  ;;  %v314_v46 = vadd.f32 %v313_v43, %v307_v39 }
  0xc4   :  { %v242_v60 = vpop.f32.mrf.mxu2 }
  0xc5   :  { %v315_v58 = vadd.f32 %v314_v46, %v308_v42  ;;  %v310_v62 = vmul.f32 %v242_v60, %v242_v60 }
  0xc7   :  { %v316_v61 = vadd.f32 %v315_v58, %v309_v47 }
  0xc8   :  { %v266_v57 = vpop.f32.mrf.mxu1 }
  0xc9   :  { %v348_v3 = vmul.f32 %v266_v57, %v266_v57  ;;  %v317_v0 = vadd.f32 %v316_v61, %v310_v62  ;;  %v946_v61 = vld [vmem:[%s1468_s1 + $0xa0] sm:$0xf0] }
  0xcb   :  { %v355_v6 = vadd.f32 %v354_v4, %v348_v3  ;;  %v318_v1 = vrot.slane %v317_v0, 4 }
  0xcd   :  { %v319_v2 = vadd.f32 %v318_v1, %v317_v0  ;;  %v856_v0 = vld [vmem:[%s1468_s1 + $0x80] sm:$0xf]  ;;  %v943_v1 = vld [vmem:[%s1468_s1 + $0x88] sm:$0xf0] }
  0xcf   :  { %v320_v3 = vrot.slane %v319_v2, 2 }
  0xd0   :  { %v1182_v63 = vpop.f32.mrf.mxu1 }
  0xd1   :  { %v349_v5 = vmul.f32 %v1182_v63, %v1182_v63 }
  0xd3   :  { %v356_v8 = vadd.f32 %v355_v6, %v349_v5 }
  0xd8   :  { %v1186_v7 = vpop.f32.mrf.mxu1 }
  0xd9   :  { %v350_v9 = vmul.f32 %v1186_v7, %v1186_v7 }
  0xdb   :  { %v357_v10 = vadd.f32 %v356_v8, %v350_v9 }
  0xdd   :  { %v358_v11 = vrot.slane %v357_v10, 4 }
  0xdf   :  { %v359_v12 = vadd.f32 %v358_v11, %v357_v10 }
  0xe1   :  { %v360_v13 = vrot.slane %v359_v12, 2 }
  0xe3   :  { %v361_v15 = vadd.f32 %v360_v13, %v359_v12 }
  0xe5   :  { %v362_v16 = vrot.slane %v361_v15, 1 }
  0xe7   :  { %v363_v17 = vadd.f32 %v362_v16, %v361_v15 }
  0xe9   :  { %v364_v19 = vmax.f32 %v363_v17, 1e-24 }
  0xeb   :  { %977 = vrsqrt.f32 %v364_v19  ;;  %vm371_vm1 = vweird.f32 %v364_v19 }
  0xf1   :  { %v978_v23 = vpop.eup %977 }
  0xf2   :  { %v366_v28 = vmul.f32 %v978_v23, %v364_v19  ;;  %vm372_vm0 = vweird.f32 %v978_v23 }
  0xf3   :  { %vm373_vm2 = vmor %vm371_vm1, %vm372_vm0 }
  0xf4   :  { %v367_v29 = vmul.f32 %v978_v23, %v366_v28 }
  0xf6   :  { %v368_v32 = vmul.f32 0.5, %v367_v29 }
  0xf8   :  { %v369_v33 = vsub.f32 1.5, %v368_v32 }
  0xfa   :  { %v370_v37 = vmul.f32 %v978_v23, %v369_v33 }
  0xfc   :  { %v374_v41 = vsel %vm373_vm2, %v978_v23, %v370_v37 }
  0xfd   :  { %v375_v44 = vmul.f32 %v374_v41, %v254_v52  ;;  %v376_v45 = vmul.f32 %v374_v41, %v256_v53  ;;  %v379_v48 = vmul.f32 %v374_v41, %v264_v56  ;;  %v380_v49 = vmul.f32 %v374_v41, %v266_v57 }
  0xfe   :  { %v377_v4 = vmul.f32 %v374_v41, %v1174_v54  ;;  %v378_v52 = vmul.f32 %v374_v41, %v1176_v55  ;;  %v321_v53 = vadd.f32 %v320_v3, %v319_v2  ;;  %v975_v54 = vld [vmem:[%s1470_s4] ss:$0 sm:$0xff]  ;;  %v382_v32 = vmul.f32 %v374_v41, %v1186_v7 }
  0xff   :  { %v399_v50 = vpack.c.bf16 %v376_v45, %v375_v44  ;;  %v401_v59 = vpack.c.bf16 %v380_v49, %v379_v48  ;;  %v381_v33 = vmul.f32 %v374_v41, %v1182_v63  ;;  %v880_v49 = vld [vmem:[%s1468_s1 + $0xb0] sm:$0xf]  ;;  %v857_v2 = vor.u32 %v943_v1, %v856_v0  ;;  %v403_v3 = vld [vmem:[%s1471_s5] sm:$0xff] }
 0x100   :  { %v322_v5 = vrot.slane %v321_v53, 1  ;;  %v400_v6 = vpack.c.bf16 %v378_v52, %v377_v4  ;;  %v407_v4 = vld [vmem:[%s1471_s5 + $0x20] sm:$0xff] }
 0x101   :  { %419 = vxpose.xlu0.c.b16.start [1/4] (short) %v399_v50, 128  ;;  %v949_v50 = vld [vmem:[%s1468_s1 + $0xb8] sm:$0xf0] }
 0x102   :  { %v323_v56 = vadd.f32 %v322_v5, %v321_v53  ;;  %v881_v58 = vor.u32 %v949_v50, %v880_v49  ;;  %v410_v49 = vld [vmem:[%s1471_s5 + $0x38] sm:$0xff] }
 0x104   :  { %v324_v57 = vmax.f32 %v323_v56, 1e-24  ;;  %274 = vmatpush.bf16.msrb.mxu2 %v881_v58  ;;  %v940_v56 = vld [vmem:[%s1468_s1 + $0x70] sm:$0xf0] }
 0x105   :  { %v413_v58 = vld [vmem:[%s1471_s5 + $0x50] sm:$0xff] }
 0x106   :  { %979 = vrsqrt.f32 %v324_v57  ;;  %vm331_vm3 = vweird.f32 %v324_v57 }
 0x10c   :  { %v980_v8 = vpop.eup %979 }
 0x10d   :  { %v326_v9 = vmul.f32 %v980_v8, %v324_v57  ;;  %vm332_vm4 = vweird.f32 %v980_v8 }
 0x10e   :  { %vm333_vm5 = vmor %vm331_vm3, %vm332_vm4 }
 0x10f   :  { %v327_v10 = vmul.f32 %v980_v8, %v326_v9  ;;  %v832_v9 = vld [vmem:[%s1468_s1 + $0x50] sm:$0xf] }
 0x111   :  { %420 = vxpose.xlu0.c.b16.cont [2/4] (short) %v400_v6, 128  ;;  %v328_v11 = vmul.f32 0.5, %v327_v10  ;;  %v844_v6 = vld [vmem:[%s1468_s1 + $0x68] sm:$0xf]  ;;  %v937_v10 = vld [vmem:[%s1468_s1 + $0x58] sm:$0xf0] }
 0x113   :  { %v329_v12 = vsub.f32 1.5, %v328_v11  ;;  %v833_v11 = vor.u32 %v937_v10, %v832_v9 }
 0x115   :  { %v330_v13 = vmul.f32 %v980_v8, %v329_v12  ;;  %v404_v12 = vld [vmem:[%s1471_s5 + $0x8] sm:$0xff] }
 0x117   :  { %v334_v55 = vsel %vm333_vm5, %v980_v8, %v330_v13  ;;  %v845_v8 = vor.u32 %v940_v56, %v844_v6  ;;  %v408_v13 = vld [vmem:[%s1471_s5 + $0x28] sm:$0xff] }
 0x118   :  { %v342_v15 = vmul.f32 %v334_v55, %v242_v60  ;;  %v341_v16 = vmul.f32 %v334_v55, %v240_v36  ;;  %v339_v17 = vmul.f32 %v334_v55, %v1192_v18  ;;  %v340_v19 = vmul.f32 %v334_v55, %v237_v27  ;;  %v868_v60 = vld [vmem:[%s1468_s1 + $0x98] sm:$0xf] }
 0x119   :  { %v337_v21 = vmul.f32 %v334_v55, %v230_v26  ;;  %v338_v22 = vmul.f32 %v334_v55, %v232_v35  ;;  %v335_v34 = vmul.f32 %v334_v55, %v1190_v14  ;;  %v336_v18 = vmul.f32 %v334_v55, %v1194_v20 }
 0x11a   :  { %v393_v23 = vmul.f32 %v975_v54, %v341_v16  ;;  %v394_v28 = vmul.f32 %v975_v54, %v342_v15  ;;  %v391_v29 = vmul.f32 %v975_v54, %v339_v17  ;;  %v392_v30 = vmul.f32 %v975_v54, %v340_v19  ;;  %v820_v16 = vld [vmem:[%s1468_s1 + $0x38] sm:$0xf]  ;;  %v934_v17 = vld [vmem:[%s1468_s1 + $0x40] sm:$0xf0] }
 0x11b   :  { %v389_v39 = vmul.f32 %v975_v54, %v337_v21  ;;  %v390_v36 = vmul.f32 %v975_v54, %v338_v22  ;;  %v402_v27 = vpack.c.bf16 %v382_v32, %v381_v33  ;;  %v387_v35 = vmul.f32 %v975_v54, %v335_v34  ;;  %v808_v22 = vld [vmem:[%s1468_s1 + $0x20] sm:$0xf]  ;;  %v796_v34 = vld [vmem:[%s1468_s1 + $0x8] sm:$0xf] }
 0x11c   :  { %v398_v31 = vpack.c.bf16 %v394_v28, %v393_v23  ;;  %v397_v37 = vpack.c.bf16 %v392_v30, %v391_v29  ;;  %v388_v40 = vmul.f32 %v975_v54, %v336_v18  ;;  %v869_v62 = vor.u32 %v946_v61, %v868_v60  ;;  %v931_v23 = vld [vmem:[%s1468_s1 + $0x28] sm:$0xf0]  ;;  %v405_v29 = vld [vmem:[%s1471_s5 + $0x10] sm:$0xff]  ;;  %v414_v60 = vld [vmem:[%s1471_s5 + $0x58] sm:$0xff] }
 0x11d   :  { %v396_v26 = vpack.c.bf16 %v390_v36, %v389_v39  ;;  %v821_v21 = vor.u32 %v934_v17, %v820_v16  ;;  %v809_v28 = vor.u32 %v931_v23, %v808_v22  ;;  %v409_v30 = vld [vmem:[%s1471_s5 + $0x30] sm:$0xff] }
 0x11e   :  { %464 = vmatpush.bf16.msra.mxu3 %v398_v31  ;;  %v395_v42 = vpack.c.bf16 %v388_v40, %v387_v35  ;;  %275 = vmatpush.bf16.msrb.mxu2 %v869_v62  ;;  %v417_v62 = vld [vmem:[%s1471_s5 + $0x70] sm:$0xff] }
 0x121   :  { %421 = vxpose.xlu0.c.b16.cont [3/4] (short) %v401_v59, 128 }
 0x122   :  { %465 = vmatpush.bf16.msra.mxu3 %v397_v37  ;;  %276 = vmatpush.bf16.msrb.mxu2 %v857_v2  ;;  %v928_v37 = vld [vmem:[%s1468_s1 + $0x10] sm:$0xf0] }
 0x123   :  { %v797_v36 = vor.u32 %v928_v37, %v796_v34 }
 0x126   :  { %466 = vmatpush.bf16.msra.mxu3 %v396_v26  ;;  %277 = vmatpush.bf16.msrb.mxu2 %v845_v8 }
 0x12a   :  { %467 = vmatpush.bf16.msra.mxu3 %v395_v42  ;;  %278 = vmatpush.bf16.msrb.mxu2 %v833_v11 }
 0x12e   :  { %279 = vmatpush.bf16.msrb.mxu2 %v821_v21 }
 0x131   :  { %422 = vxpose.xlu0.c.b16.end [4/4] (short) %v402_v27, 128 }
 0x132   :  { %280 = vmatpush.bf16.msrb.mxu2 %v809_v28 }
 0x136   :  { %281 = vmatpush.bf16.msrb.mxu2 %v797_v36 }
 0x139   :  { %282 = vmatmul.bf16.vlgmr.msrb.gmra.mxu2 %v1101_v24  ;;  %v415_v24 = vld [vmem:[%s1471_s5 + $0x60] sm:$0xff] }
 0x149   :  { %287 = vmatmul.bf16.gmra.mxu2 %v1107_v25 }
 0x159   :  { %292 = vmatmul.bf16.gmra.mxu2 %v1137_v38  ;;  %v416_v38 = vld [vmem:[%s1471_s5 + $0x68] sm:$0xff] }
 0x169   :  { %297 = vmatmul.bf16.gmra.mxu2 %v1167_v51  ;;  %v406_v51 = vld [vmem:[%s1471_s5 + $0x18] sm:$0xff] }
 0x1ad   :  { %v427_v7 = vpop.trf.xlu0 }
 0x1ae   :  { %882 = vmatmul.msk.bf16.vlgmr.msra.gmra.mxu3 %vm435_vm6, %v427_v7  ;;  %v411_v7 = vld [vmem:[%s1471_s5 + $0x40] sm:$0xff] }
 0x1bd   :  { %v428_v63 = vpop.trf.xlu0 }
 0x1be   :  { %883 = vmatmul.msk.bf16.gmra.mxu3 %vm435_vm6, %v428_v63  ;;  %v412_v63 = vld [vmem:[%s1471_s5 + $0x48] sm:$0xff] }
 0x1cd   :  { %v429_v14 = vpop.trf.xlu0 }
 0x1ce   :  { %884 = vmatmul.msk.bf16.gmra.mxu3 %vm435_vm6, %v429_v14 }
 0x1dd   :  { %v430_v20 = vpop.trf.xlu0 }
 0x1de   :  { %885 = vmatmul.msk.bf16.gmra.mxu3 %vm435_vm6, %v430_v20 }
 0x1ed   :  { %v431_v41 = vpop.trf.xlu0 }
 0x1ee   :  { %886 = vmatmul.msk.bf16.gmra.mxu3 %vm435_vm6, %v431_v41 }
 0x1fd   :  { %v432_v43 = vpop.trf.xlu0 }
 0x1fe   :  { %887 = vmatmul.msk.bf16.gmra.mxu3 %vm435_vm6, %v432_v43 }
 0x20d   :  { %v433_v44 = vpop.trf.xlu0 }
 0x20e   :  { %888 = vmatmul.msk.bf16.gmra.mxu3 %vm435_vm6, %v433_v44 }
 0x21d   :  { %v434_v45 = vpop.trf.xlu0 }
 0x21e   :  { %889 = vmatmul.msk.bf16.gmra.mxu3 %vm435_vm6, %v434_v45 }
 0x231   :  { %v469_v46 = vpop.f32.mrf.mxu3 }
 0x232   :  { %v1246_v53 = vadd.f32 %v469_v46, %v403_v3  ;;  %v418_v3 = vld [vmem:[%s1471_s5 + $0x78] sm:$0xff] }
 0x239   :  { %v471_v47 = vpop.f32.mrf.mxu3 }
 0x23a   :  { %v1270_v55 = vadd.f32 %v471_v47, %v404_v12 }
 0x241   :  { %v474_v48 = vpop.f32.mrf.mxu3 }
 0x242   :  { %v1294_v32 = vadd.f32 %v474_v48, %v405_v29 }
 0x249   :  { %v1226_v59 = vpop.f32.mrf.mxu3 }
 0x24a   :  { %v477_v0 = vadd.f32 %v1226_v59, %v406_v51 }
 0x251   :  { %v479_v52 = vpop.f32.mrf.mxu3 }
 0x252   :  { %v1248_v5 = vadd.f32 %v479_v52, %v407_v4 }
 0x254   :  { %v509_v57 = vmax.f32 %v1246_v53, %v1248_v5 }
 0x259   :  { %v481_v54 = vpop.f32.mrf.mxu3 }
 0x25a   :  { %v1272_v15 = vadd.f32 %v481_v54, %v408_v13 }
 0x25c   :  { %v510_v19 = vmax.f32 %v1270_v55, %v1272_v15 }
 0x261   :  { %v484_v31 = vpop.f32.mrf.mxu3 }
 0x262   :  { %v1296_v33 = vadd.f32 %v484_v31, %v409_v30 }
 0x264   :  { %v511_v39 = vmax.f32 %v1294_v32, %v1296_v33 }
 0x269   :  { %v486_v18 = vpop.f32.mrf.mxu3 }
 0x26a   :  { %v487_v61 = vadd.f32 %v486_v18, %v410_v49 }
 0x26c   :  { %v512_v4 = vmax.f32 %v477_v0, %v487_v61 }
 0x271   :  { %v489_v27 = vpop.f32.mrf.mxu3 }
 0x272   :  { %v1318_v14 = vadd.f32 %v489_v27, %v411_v7 }
 0x274   :  { %v513_v43 = vmax.f32 %v509_v57, %v1318_v14 }
 0x279   :  { %v491_v26 = vpop.f32.mrf.mxu3 }
 0x27a   :  { %v1320_v25 = vadd.f32 %v491_v26, %v412_v63 }
 0x27c   :  { %v514_v44 = vmax.f32 %v510_v19, %v1320_v25 }
 0x281   :  { %v494_v35 = vpop.f32.mrf.mxu3 }
 0x282   :  { %v495_v1 = vadd.f32 %v494_v35, %v413_v58 }
 0x284   :  { %v515_v56 = vmax.f32 %v511_v39, %v495_v1 }
 0x289   :  { %v496_v40 = vpop.f32.mrf.mxu3 }
 0x28a   :  { %v1350_v2 = vadd.f32 %v496_v40, %v414_v60 }
 0x28c   :  { %v516_v57 = vmax.f32 %v512_v4, %v1350_v2 }
 0x291   :  { %v499_v42 = vpop.f32.mrf.mxu3 }
 0x292   :  { %v1325_v20 = vadd.f32 %v499_v42, %v415_v24 }
 0x294   :  { %v517_v46 = vmax.f32 %v513_v43, %v1325_v20 }
 0x299   :  { %v501_v41 = vpop.f32.mrf.mxu3 }
 0x29a   :  { %v1330_v45 = vadd.f32 %v501_v41, %v416_v38 }
 0x29c   :  { %v518_v47 = vmax.f32 %v514_v44, %v1330_v45 }
 0x29e   :  { %v521_v48 = vmax.f32 %v517_v46, %v518_v47 }
 0x2a1   :  { %v504_v50 = vpop.f32.mrf.mxu3 }
 0x2a2   :  { %v1355_v52 = vadd.f32 %v504_v50, %v417_v62 }
 0x2a4   :  { %v519_v9 = vmax.f32 %v515_v56, %v1355_v52 }
 0x2a9   :  { %v506_v6 = vpop.f32.mrf.mxu3 }
 0x2aa   :  { %v1358_v8 = vadd.f32 %v506_v6, %v418_v3 }
 0x2ac   :  { %v520_v59 = vmax.f32 %v516_v57, %v1358_v8 }
 0x2ae   :  { %v522_v10 = vmax.f32 %v519_v9, %v520_v59 }
 0x2b0   :  { %v523_v11 = vmax.f32 %v521_v48, %v522_v10 }
 0x2b2   :  { %v524_v12 = vrot.slane %v523_v11, 4 }
 0x2b4   :  { %v525_v13 = vmax.f32 %v523_v11, %v524_v12 }
 0x2b6   :  { %v526_v54 = vrot.slane %v525_v13, 2 }
 0x2b8   :  { %v527_v16 = vmax.f32 %v525_v13, %v526_v54 }
 0x2ba   :  { %v528_v17 = vrot.slane %v527_v16, 1 }
 0x2bc   :  { %v1362_v19 = vmax.f32 %v527_v16, %v528_v17 }
 0x2be   :  { %v530_v21 = vsub.f32 %v1246_v53, %v1362_v19  ;;  %v531_v22 = vsub.f32 %v1270_v55, %v1362_v19  ;;  %v532_v23 = vsub.f32 %v1294_v32, %v1362_v19  ;;  %v533_v28 = vsub.f32 %v477_v0, %v1362_v19 }
 0x2bf   :  { %v534_v29 = vsub.f32 %v1248_v5, %v1362_v19  ;;  %v535_v30 = vsub.f32 %v1272_v15, %v1362_v19  ;;  %v536_v31 = vsub.f32 %v1296_v33, %v1362_v19  ;;  %v537_v32 = vsub.f32 %v487_v61, %v1362_v19 }
 0x2c0   :  { %v546_v34 = vmul.f32 1.442695, %v530_v21  ;;  %v548_v37 = vmul.f32 1.442695, %v531_v22  ;;  %v550_v53 = vmul.f32 1.442695, %v532_v23  ;;  %v538_v15 = vsub.f32 %v1318_v14, %v1362_v19 }
 0x2c1   :  { %v552_v55 = vmul.f32 1.442695, %v533_v28  ;;  %v554_v39 = vmul.f32 1.442695, %v534_v29  ;;  %v556_v36 = vmul.f32 1.442695, %v535_v30  ;;  %v539_v35 = vsub.f32 %v1320_v25, %v1362_v19 }
 0x2c2   :  { %981 = vpow2.f32 %v546_v34  ;;  %v558_v33 = vmul.f32 1.442695, %v536_v31  ;;  %v560_v40 = vmul.f32 1.442695, %v537_v32  ;;  %v540_v63 = vsub.f32 %v495_v1, %v1362_v19 }
 0x2c3   :  { %983 = vpow2.f32 %v548_v37  ;;  %v562_v24 = vmul.f32 1.442695, %v538_v15  ;;  %v541_v41 = vsub.f32 %v1350_v2, %v1362_v19  ;;  %v564_v43 = vmul.f32 1.442695, %v539_v35 }
 0x2c4   :  { %985 = vpow2.f32 %v550_v53  ;;  %v542_v46 = vsub.f32 %v1325_v20, %v1362_v19  ;;  %v566_v47 = vmul.f32 1.442695, %v540_v63  ;;  %v543_v50 = vsub.f32 %v1330_v45, %v1362_v19 }
 0x2c5   :  { %987 = vpow2.f32 %v552_v55  ;;  %v568_v51 = vmul.f32 1.442695, %v541_v41  ;;  %v544_v61 = vsub.f32 %v1355_v52, %v1362_v19  ;;  %v545_v20 = vsub.f32 %v1358_v8, %v1362_v19 }
 0x2c6   :  { %989 = vpow2.f32 %v554_v39  ;;  %v570_v62 = vmul.f32 1.442695, %v542_v46  ;;  %v572_v2 = vmul.f32 1.442695, %v543_v50  ;;  %v283_v50 = vpop.f32.mrf.mxu2 }
 0x2c7   :  { %991 = vpow2.f32 %v556_v36  ;;  %v574_v45 = vmul.f32 1.442695, %v544_v61  ;;  %v576_v57 = vmul.f32 1.442695, %v545_v20 }
 0x2c8   :  { %v1378_v18 = vpop.eup %981  ;;  %993 = vpow2.f32 %v558_v33 }
 0x2c9   :  { %v1380_v5 = vpop.eup %983  ;;  %995 = vpow2.f32 %v560_v40 }
 0x2ca   :  { %v578_v27 = vadd.f32 %v1380_v5, %v1378_v18  ;;  %v1386_v26 = vpop.eup %985  ;;  %997 = vpow2.f32 %v562_v24 }
 0x2cb   :  { %v1391_v7 = vpop.eup %987  ;;  %999 = vpow2.f32 %v564_v43 }
 0x2cc   :  { %v579_v42 = vadd.f32 %v1386_v26, %v578_v27  ;;  %v1395_v38 = vpop.eup %989  ;;  %1001 = vpow2.f32 %v566_v47 }
 0x2cd   :  { %v1400_v44 = vpop.eup %991  ;;  %1003 = vpow2.f32 %v568_v51 }
 0x2ce   :  { %v580_v14 = vadd.f32 %v1391_v7, %v579_v42  ;;  %v994_v49 = vpop.eup %993  ;;  %1005 = vpow2.f32 %v570_v62  ;;  %v954_v62 = vld [vmem:[%s1472_s2 + $0x20] sm:$0xff] }
 0x2cf   :  { %v996_v60 = vpop.eup %995  ;;  %1007 = vpow2.f32 %v572_v2 }
 0x2d0   :  { %v581_v25 = vadd.f32 %v1395_v38, %v580_v14  ;;  %v998_v1 = vpop.eup %997  ;;  %1009 = vpow2.f32 %v574_v45  ;;  %v951_v45 = vld [vmem:[%s1472_s2 + $0x8] sm:$0xff] }
 0x2d1   :  { %v1000_v4 = vpop.eup %999  ;;  %1011 = vpow2.f32 %v576_v57 }
 0x2d2   :  { %v582_v48 = vadd.f32 %v1400_v44, %v581_v25  ;;  %v1002_v56 = vpop.eup %1001 }
 0x2d3   :  { %v1004_v59 = vpop.eup %1003 }
 0x2d4   :  { %v583_v58 = vadd.f32 %v994_v49, %v582_v48  ;;  %v1006_v10 = vpop.eup %1005 }
 0x2d5   :  { %v1008_v12 = vpop.eup %1007 }
 0x2d6   :  { %v584_v0 = vadd.f32 %v996_v60, %v583_v58  ;;  %v1010_v8 = vpop.eup %1009  ;;  %v956_v58 = vld [vmem:[%s1472_s2 + $0x30] sm:$0xff] }
 0x2d7   :  { %v1012_v16 = vpop.eup %1011 }
 0x2d8   :  { %v585_v3 = vadd.f32 %v998_v1, %v584_v0 }
 0x2da   :  { %v586_v6 = vadd.f32 %v1000_v4, %v585_v3 }
 0x2dc   :  { %v587_v9 = vadd.f32 %v1002_v56, %v586_v6  ;;  %v950_v6 = vld [vmem:[%s1472_s2] sm:$0xff] }
 0x2de   :  { %v588_v52 = vadd.f32 %v1004_v59, %v587_v9 }
 0x2e0   :  { %v589_v11 = vadd.f32 %v1006_v10, %v588_v52 }
 0x2e2   :  { %v590_v13 = vadd.f32 %v1008_v12, %v589_v11 }
 0x2e4   :  { %v591_v54 = vadd.f32 %v1010_v8, %v590_v13 }
 0x2e6   :  { %v592_v17 = vadd.f32 %v1012_v16, %v591_v54 }
 0x2e8   :  { %v593_v19 = vrot.slane %v592_v17, 4 }
 0x2ea   :  { %v594_v21 = vadd.f32 %v593_v19, %v592_v17  ;;  %v976_v17 = vld [vmem:[%s1473_s3] ss:$0 sm:$0xff] }
 0x2ec   :  { %v595_v22 = vrot.slane %v594_v21, 2 }
 0x2ee   :  { %v596_v23 = vadd.f32 %v595_v22, %v594_v21 }
 0x2f0   :  { %v597_v28 = vrot.slane %v596_v23, 1 }
 0x2f2   :  { %v598_v29 = vadd.f32 %v597_v28, %v596_v23 }
 0x2f4   :  { %1013 = vrcp.f32 %v598_v29 }
 0x2fa   :  { %v1014_v30 = vpop.eup %1013 }
 0x2fb   :  { %v614_v31 = vmul.f32 %v1014_v30, %v1010_v8  ;;  %v615_v34 = vmul.f32 %v1014_v30, %v1012_v16  ;;  %v612_v37 = vmul.f32 %v1014_v30, %v1006_v10  ;;  %v613_v53 = vmul.f32 %v1014_v30, %v1008_v12 }
 0x2fc   :  { %v610_v55 = vmul.f32 %v1014_v30, %v1002_v56  ;;  %v611_v39 = vmul.f32 %v1014_v30, %v1004_v59  ;;  %v608_v32 = vmul.f32 %v1014_v30, %v998_v1  ;;  %v609_v36 = vmul.f32 %v1014_v30, %v1000_v4  ;;  %v953_v1 = vld [vmem:[%s1472_s2 + $0x18] sm:$0xff]  ;;  %v952_v4 = vld [vmem:[%s1472_s2 + $0x10] sm:$0xff] }
 0x2fd   :  { %v627_v15 = vpack.c.bf16 %v615_v34, %v614_v31  ;;  %v626_v33 = vpack.c.bf16 %v613_v53, %v612_v37  ;;  %v606_v27 = vmul.f32 %v1014_v30, %v994_v49  ;;  %v607_v35 = vmul.f32 %v1014_v30, %v996_v60  ;;  %v955_v60 = vld [vmem:[%s1472_s2 + $0x28] sm:$0xff] }
 0x2fe   :  { %v625_v40 = vpack.c.bf16 %v611_v39, %v610_v55  ;;  %v624_v42 = vpack.c.bf16 %v609_v36, %v608_v32  ;;  %v604_v63 = vmul.f32 %v1014_v30, %v1395_v38  ;;  %v605_v24 = vmul.f32 %v1014_v30, %v1400_v44  ;;  %v285_v38 = vpop.f32.mrf.mxu2 }
 0x2ff   :  { %628 = vmatpush.bf16.msrb.mxu0 %v627_v15  ;;  %v623_v14 = vpack.c.bf16 %v607_v35, %v606_v27  ;;  %v602_v41 = vmul.f32 %v1014_v30, %v1386_v26  ;;  %v603_v43 = vmul.f32 %v1014_v30, %v1391_v7  ;;  %v600_v25 = vmul.f32 %v1014_v30, %v1378_v18 }
 0x300   :  { %v622_v46 = vpack.c.bf16 %v605_v24, %v604_v63  ;;  %v601_v47 = vmul.f32 %v1014_v30, %v1380_v5  ;;  %v616_v26 = vpack.c.bf16 %v285_v38, %v283_v50  ;;  %v957_v5 = vld [vmem:[%s1472_s2 + $0x38] sm:$0xff] }
 0x301   :  { %v621_v48 = vpack.c.bf16 %v603_v43, %v602_v41  ;;  %966 = vmatpush.bf16.msrb.mxu1 %v957_v5 }
 0x302   :  { %v620_v49 = vpack.c.bf16 %v601_v47, %v600_v25 }
 0x303   :  { %629 = vmatpush.bf16.msrb.mxu0 %v626_v33 }
 0x305   :  { %967 = vmatpush.bf16.msrb.mxu1 %v956_v58 }
 0x306   :  { %v288_v44 = vpop.f32.mrf.mxu2 }
 0x307   :  { %630 = vmatpush.bf16.msrb.mxu0 %v625_v40 }
 0x309   :  { %968 = vmatpush.bf16.msrb.mxu1 %v955_v60 }
 0x30b   :  { %631 = vmatpush.bf16.msrb.mxu0 %v624_v42 }
 0x30d   :  { %969 = vmatpush.bf16.msrb.mxu1 %v954_v62 }
 0x30e   :  { %v290_v7 = vpop.f32.mrf.mxu2 }
 0x30f   :  { %632 = vmatpush.bf16.msrb.mxu0 %v623_v14  ;;  %v617_v18 = vpack.c.bf16 %v290_v7, %v288_v44 }
 0x311   :  { %970 = vmatpush.bf16.msrb.mxu1 %v953_v1 }
 0x313   :  { %633 = vmatpush.bf16.msrb.mxu0 %v622_v46 }
 0x315   :  { %971 = vmatpush.bf16.msrb.mxu1 %v952_v4 }
 0x316   :  { %v293_v51 = vpop.f32.mrf.mxu2 }
 0x317   :  { %634 = vmatpush.bf16.msrb.mxu0 %v621_v48 }
 0x319   :  { %972 = vmatpush.bf16.msrb.mxu1 %v951_v45 }
 0x31b   :  { %635 = vmatpush.bf16.msrb.mxu0 %v620_v49 }
 0x31d   :  { %973 = vmatpush.bf16.msrb.mxu1 %v950_v6 }
 0x31e   :  { %636 = vmatmul.bf16.vlgmr.msrb.gmra.mxu0 %v616_v26  ;;  %v295_v61 = vpop.f32.mrf.mxu2 }
 0x31f   :  { %729 = vmatpush.bf16.msra.mxu0 %v957_v5  ;;  %v618_v0 = vpack.c.bf16 %v295_v61, %v293_v51 }
 0x323   :  { %730 = vmatpush.bf16.msra.mxu0 %v956_v58 }
 0x326   :  { %v298_v20 = vpop.f32.mrf.mxu2 }
 0x327   :  { %731 = vmatpush.bf16.msra.mxu0 %v955_v60 }
 0x32b   :  { %732 = vmatpush.bf16.msra.mxu0 %v954_v62 }
 0x32e   :  { %641 = vmatmul.bf16.gmra.mxu0 %v617_v18  ;;  %v300_v2 = vpop.f32.mrf.mxu2 }
 0x32f   :  { %733 = vmatpush.bf16.msra.mxu0 %v953_v1  ;;  %v619_v3 = vpack.c.bf16 %v300_v2, %v298_v20 }
 0x333   :  { %734 = vmatpush.bf16.msra.mxu0 %v952_v4 }
 0x337   :  { %735 = vmatpush.bf16.msra.mxu0 %v951_v45 }
 0x33b   :  { %736 = vmatpush.bf16.msra.mxu0 %v950_v6 }
 0x33e   :  { %646 = vmatmul.bf16.gmra.mxu0 %v618_v0 }
 0x34e   :  { %651 = vmatmul.bf16.gmra.mxu0 %v619_v3 }
 0x39b   :  { %v637_v56 = vpop.f32.mrf.mxu0 }
 0x3a3   :  { %v639_v57 = vpop.f32.mrf.mxu0 }
 0x3a4   :  { %v657_v9 = vpack.c.bf16 %v639_v57, %v637_v56 }
 0x3a6   :  { %737 = vmatmul.bf16.vlgmr.msra.gmra.mxu0 %v657_v9 }
 0x3ab   :  { %v642_v59 = vpop.f32.mrf.mxu0 }
 0x3b3   :  { %v644_v52 = vpop.f32.mrf.mxu0 }
 0x3b4   :  { %v658_v10 = vpack.c.bf16 %v644_v52, %v642_v59 }
 0x3b6   :  { %742 = vmatmul.bf16.vlgmr.msrb.gmra.mxu1 %v658_v10 }
 0x3bb   :  { %v647_v11 = vpop.f32.mrf.mxu0 }
 0x3c3   :  { %v649_v12 = vpop.f32.mrf.mxu0 }
 0x3c4   :  { %v659_v13 = vpack.c.bf16 %v649_v12, %v647_v11 }
 0x3c6   :  { %747 = vmatmul.bf16.gmra.mxu1 %v659_v13 }
 0x3cb   :  { %v652_v8 = vpop.f32.mrf.mxu0 }
 0x3d3   :  { %v654_v54 = vpop.f32.mrf.mxu0 }
 0x3d4   :  { %v660_v16 = vpack.c.bf16 %v654_v54, %v652_v8 }
 0x3d6   :  { %752 = vmatmul.bf16.gmra.mxu1 %v660_v16 }
 0x423   :  { %v738_v19 = vpop.f32.mrf.mxu0 }
 0x424   :  { %v739_v21 = vadd.f32 %v976_v17, %v738_v19 }
 0x426   :  { %758 = vst [vmem:[%s1474_s6] sm:$0xff] %v739_v21 }
 0x42b   :  { %v740_v22 = vpop.f32.mrf.mxu0 }
 0x42c   :  { %v741_v23 = vadd.f32 %v976_v17, %v740_v22 }
 0x42e   :  { %759 = vst [vmem:[%s1474_s6 + $0x8] sm:$0xff] %v741_v23 }
 0x433   :  { %v743_v28 = vpop.f32.mrf.mxu1 }
 0x434   :  { %v744_v29 = vadd.f32 %v976_v17, %v743_v28 }
 0x436   :  { %760 = vst [vmem:[%s1474_s6 + $0x10] sm:$0xff] %v744_v29 }
 0x43b   :  { %v745_v30 = vpop.f32.mrf.mxu1 }
 0x43c   :  { %v746_v31 = vadd.f32 %v976_v17, %v745_v30 }
 0x43e   :  { %761 = vst [vmem:[%s1474_s6 + $0x18] sm:$0xff] %v746_v31 }
 0x443   :  { %v748_v34 = vpop.f32.mrf.mxu1 }
 0x444   :  { %v749_v37 = vadd.f32 %v976_v17, %v748_v34 }
 0x446   :  { %762 = vst [vmem:[%s1474_s6 + $0x20] sm:$0xff] %v749_v37 }
 0x44b   :  { %v750_v53 = vpop.f32.mrf.mxu1 }
 0x44c   :  { %v751_v55 = vadd.f32 %v976_v17, %v750_v53 }
 0x44e   :  { %763 = vst [vmem:[%s1474_s6 + $0x28] sm:$0xff] %v751_v55 }
 0x453   :  { %v753_v39 = vpop.f32.mrf.mxu1 }
 0x454   :  { %v754_v32 = vadd.f32 %v976_v17, %v753_v39 }
 0x456   :  { %764 = vst [vmem:[%s1474_s6 + $0x30] sm:$0xff] %v754_v32 }
 0x45b   :  { %v755_v36 = vpop.f32.mrf.mxu1 }
 0x45c   :  { %v756_v15 = vadd.f32 %v976_v17, %v755_v36 }
 0x45e   :  { %765 = vst [vmem:[%s1474_s6 + $0x38] sm:$0xff] %v756_v15 }

</bundles_post_ra>
